<compile_context>
chip_gen: v7x
topology: tpu7x:2x2x1
jax: 0.10.0
libtpu: 0.0.40
codegen_flags: <defaults>
</compile_context>

<pallas_src>
import functools

import jax
import jax.numpy as jnp
from jax.experimental import pallas as pl
from jax.experimental.pallas import tpu as pltpu

LANES = 128
_VMEM = functools.partial(pl.BlockSpec, memory_space=pltpu.MemorySpace.VMEM)


def _round_up(x, m):
    return ((x + m - 1) // m) * m


def _vmem_limit_bytes():
    """Generation-aware scoped-VMEM ceiling.

    v7x has 64 MiB physical VMEM per TensorCore -> cap ~56 MiB; v5e/v6e have 128 MiB
    -> allow ~110 MiB.  Falls back to a conservative 32 MiB if the query fails.
    """
    try:
        cap = int(pltpu.get_tpu_info().vmem_capacity_bytes)
    except Exception:
        return 32 * 1024 * 1024
    headroom = 8 * 1024 * 1024  # output buffer + compiler internal scratch
    return max(32 * 1024 * 1024, min(cap - headroom, 110 * 1024 * 1024))


# ----------------------------------------------------------------------------
# Fused kernel: all hetero layers + ReLU + final Linear + softmax.
# ----------------------------------------------------------------------------
def _make_fused_kernel(num_layers):
    def kernel(a_sum_ref, dinv_ref, x0_ref, w_all_ref, au_all_ref,
               w_fin_ref, b_fin_ref, out_ref):
        bf16 = jnp.bfloat16
        a = a_sum_ref[...]          # bf16 [n_sub, n_sub] (exact integer counts)
        dinv = dinv_ref[...]        # f32  [n_sub, 1]  reciprocal in-degree
        x = x0_ref[...]             # bf16 [n_sub, hidden] (layer-0 features, lane-padded)

        for l in range(num_layers):
            # sub->sub aggregation as a dense-adjacency matmul on the MXU.
            agg = jnp.dot(a, x, preferred_element_type=jnp.float32)
            if l > 0:
                # layers > 0 use the SAGEConv default aggr='mean': f32 row scale of the
                # exact bf16-integer sum (more accurate than a bf16 a_mean matrix).
                agg = agg * dinv
            # One K-concatenated matmul:  [agg | x] @ [[wl_sub],[wr_tot]]
            # (K = 2*hidden = 256 fills the v6e/v7x MXU; saves an MRF pop + f32 add).
            lhs = jnp.concatenate([agg.astype(bf16), x], axis=-1)
            o = jnp.dot(lhs, w_all_ref[l], preferred_element_type=jnp.float32)
            # Hoisted loop-invariant agr/urb term (includes all folded lin_l biases).
            o = o + au_all_ref[l]
            # HeteroConv aggr='sum' already folded; norm = Identity; ReLU.
            x = jnp.maximum(o, 0.0).astype(bf16)
            # TODO(synk): nn.Dropout(0.5) is identity in eval mode, so not modeled.

        # Final Linear + softmax.  Padded logit columns carry a -inf bias -> exp()==0,
        # so real-class probabilities are unaffected while the store stays lane-dense.
        logits = jnp.dot(x, w_fin_ref[...], preferred_element_type=jnp.float32)
        logits = logits + b_fin_ref[...]
        m = jnp.max(logits, axis=1, keepdims=True)
        e = jnp.exp(logits - m)
        s = jnp.sum(e, axis=1, keepdims=True)
        # exact reciprocal kept so softmax rows sum to 1 within ~1e-6 for the asserts.
        out_ref[...] = e * pl.reciprocal(s, approx=False)

    return kernel


# ----------------------------------------------------------------------------
# Graph / parameter preprocessing (one-time, outside the hot loop).
# ----------------------------------------------------------------------------
def dense_adj(edge_index, n_dst, n_src):
    # Note: bf16 adjacency entries are exact for edge multiplicities <= 256 per
    # (dst, src) pair, which holds for any sane watershed graph.
    src, dst = edge_index[0], edge_index[1]
    a = jnp.zeros((n_dst, n_src), jnp.float32)
    return a.at[dst, src].add(1.0)


def row_mean(a):
    deg = jnp.sum(a, axis=1, keepdims=True)
    return a / jnp.maximum(deg, 1.0)


def _prepare_fused_inputs(x_dict, edge_index_dict, params_layers, final_w, final_b):
    bf16, f32 = jnp.bfloat16, jnp.float32
    x_sub, x_agr, x_urb = x_dict['sub'], x_dict['agr'], x_dict['urb']
    n_sub, n_agr, n_urb = x_sub.shape[0], x_agr.shape[0], x_urb.shape[0]
    in_sub = x_sub.shape[1]
    hidden = params_layers[0]['wl_sub'].shape[1]
    out_dims = final_w.shape[1]
    num_layers = len(params_layers)
    # TODO(synk): in_sub > hidden would need per-layer K padding to max(in_sub, hidden).
    assert in_sub <= hidden, "layer-0 feature width must not exceed hidden_dims"

    # Dense sum adjacency (duplicate edges counted) + f32 reciprocal in-degree vector.
    a_sub_sum = dense_adj(edge_index_dict[('sub', 'downstream', 'sub')], n_sub, n_sub)
    deg = jnp.sum(a_sub_sum, axis=1, keepdims=True)
    dinv = (1.0 / jnp.maximum(deg, 1.0)).astype(f32)           # [n_sub, 1]

    a_agr = dense_adj(edge_index_dict[('agr', 'downstream_agr', 'sub')], n_sub, n_agr)
    a_urb = dense_adj(edge_index_dict[('urb', 'downstream_urb', 'sub')], n_sub, n_urb)

    # Loop-invariant agr/urb aggregations: input-only, tiny-K -> hoisted to XLA.
    agg_agr = a_agr @ x_agr                                    # [n_sub, in_agr]
    agg_urb = a_urb @ x_urb                                    # [n_sub, in_urb]

    # Layer-0 features lane-padded to hidden so every layer has identical shapes.
    x0 = jnp.zeros((n_sub, hidden), f32).at[:, :in_sub].set(x_sub)

    # Per-layer parameter folding (exact algebra) + uniform stacking.
    w_cats, au_terms = [], []
    for l, p in enumerate(params_layers):
        d_sub = in_sub if l == 0 else hidden
        wl_sub = p['wl_sub']
        wr_tot = p['wr_sub'] + p['wr_agr'] + p['wr_urb']
        if d_sub != hidden:  # zero-pad layer-0 K rows (padded x columns are zero)
            wl_sub = jnp.zeros((hidden, hidden), f32).at[:d_sub].set(wl_sub)
            wr_tot = jnp.zeros((hidden, hidden), f32).at[:d_sub].set(wr_tot)
        w_cats.append(jnp.concatenate([wl_sub, wr_tot], axis=0).astype(bf16))
        # Hoisted loop-invariant term: lin_l_agr(agg_agr)+lin_l_urb(agg_urb)+all biases.
        b_tot = p['bl_sub'] + p['bl_agr'] + p['bl_urb']
        au = agg_agr @ p['wl_agr'] + agg_urb @ p['wl_urb'] + b_tot   # [n_sub, hidden]
        au_terms.append(au.astype(bf16))
    w_all = jnp.stack(w_cats)      # [L, 2*hidden, hidden] bf16
    au_all = jnp.stack(au_terms)   # [L, n_sub, hidden]    bf16

    # Final linear padded to a lane-dense (multiple of 128) logit width.
    pad = _round_up(max(out_dims, LANES), LANES)
    w_pad = jnp.zeros((hidden, pad), f32).at[:, :out_dims].set(final_w)
    b_pad = jnp.full((1, pad), -jnp.inf, f32).at[:, :out_dims].set(final_b)

    args = [a_sub_sum.astype(bf16), dinv, x0.astype(bf16),
            w_all, au_all, w_pad.astype(bf16), b_pad]
    return args, num_layers, n_sub, pad, out_dims


def hetero_graph_forward(x_dict, edge_index_dict, params_layers, final_w, final_b):
    args, num_layers, n_sub, pad, out_dims = _prepare_fused_inputs(
        x_dict, edge_index_dict, params_layers, final_w, final_b)
    out_pad = pl.pallas_call(
        _make_fused_kernel(num_layers),
        out_shape=jax.ShapeDtypeStruct((n_sub, pad), jnp.float32),
        in_specs=[_VMEM() for _ in args],
        out_specs=_VMEM(),
        compiler_params=pltpu.CompilerParams(vmem_limit_bytes=_vmem_limit_bytes()),
    )(*args)
    return out_pad[:, :out_dims]


# ----------------------------------------------------------------------------
# References for correctness checks.
# ----------------------------------------------------------------------------
def reference_forward_exact(x_dict, edge_index_dict, params_layers, final_w, final_b):
    """Pure f32, unfolded math mirroring the PyTorch module exactly."""
    n_sub = x_dict['sub'].shape[0]
    a_sub_sum = dense_adj(edge_index_dict[('sub', 'downstream', 'sub')], n_sub, n_sub)
    a_sub_mean = row_mean(a_sub_sum)
    a_agr = dense_adj(edge_index_dict[('agr', 'downstream_agr', 'sub')],
                      n_sub, x_dict['agr'].shape[0])
    a_urb = dense_adj(edge_index_dict[('urb', 'downstream_urb', 'sub')],
                      n_sub, x_dict['urb'].shape[0])
    x_sub = x_dict['sub']
    for i, p in enumerate(params_layers):
        a_sub = a_sub_sum if i == 0 else a_sub_mean
        o = (a_sub @ x_sub) @ p['wl_sub'] + p['bl_sub'] + x_sub @ p['wr_sub']
        o = o + (a_agr @ x_dict['agr']) @ p['wl_agr'] + p['bl_agr'] + x_sub @ p['wr_agr']
        o = o + (a_urb @ x_dict['urb']) @ p['wl_urb'] + p['bl_urb'] + x_sub @ p['wr_urb']
        x_sub = jnp.maximum(o, 0.0)
    logits = x_sub @ final_w + final_b
    return jax.nn.softmax(logits, axis=1)


def reference_forward_matched(x_dict, edge_index_dict, params_layers, final_w, final_b):
    """Same folded / bf16-cast math as the kernel (pure jnp), for a tight check."""
    f32, bf16 = jnp.float32, jnp.bfloat16
    args, num_layers, _, _, out_dims = _prepare_fused_inputs(
        x_dict, edge_index_dict, params_layers, final_w, final_b)
    a_sum, dinv, x0, w_all, au_all, w_fin, b_fin = args

    x = x0
    for l in range(num_layers):
        agg = jnp.dot(a_sum, x, preferred_element_type=f32)
        if l > 0:
            agg = agg * dinv
        lhs = jnp.concatenate([agg.astype(bf16), x], axis=-1)
        o = jnp.dot(lhs, w_all[l], preferred_element_type=f32) + au_all[l]
        x = jnp.maximum(o, 0.0).astype(bf16)
    logits = jnp.dot(x, w_fin, preferred_element_type=f32) + b_fin
    m = jnp.max(logits, axis=1, keepdims=True)
    e = jnp.exp(logits - m)
    return (e / jnp.sum(e, axis=1, keepdims=True))[:, :out_dims]


# ----------------------------------------------------------------------------
# Parameter init (per-relation params, matching the PyTorch module structure).
# ----------------------------------------------------------------------------
def init_params(key, in_sub, in_agr, in_urb, hidden, out_dims, num_layers):
    def w(k, shape):
        return (jax.random.normal(k, shape, jnp.float32) * 0.1).astype(jnp.float32)

    params_layers = []
    keys = jax.random.split(key, num_layers * 9 + 2)
    ki = 0
    for l in range(num_layers):
        d_sub = in_sub if l == 0 else hidden
        p = {
            'wl_sub': w(keys[ki + 0], (d_sub, hidden)),
            'bl_sub': w(keys[ki + 1], (1, hidden)),
            'wr_sub': w(keys[ki + 2], (d_sub, hidden)),
            'wl_agr': w(keys[ki + 3], (in_agr, hidden)),
            'bl_agr': w(keys[ki + 4], (1, hidden)),
            'wr_agr': w(keys[ki + 5], (d_sub, hidden)),
            'wl_urb': w(keys[ki + 6], (in_urb, hidden)),
            'bl_urb': w(keys[ki + 7], (1, hidden)),
            'wr_urb': w(keys[ki + 8], (d_sub, hidden)),
        }
        ki += 9
        params_layers.append(p)
    final_w = w(keys[ki], (hidden, out_dims))
    final_b = w(keys[ki + 1], (1, out_dims))
    return params_layers, final_w, final_b


if __name__ == "__main__":
    # Small synthetic hetero graph.  hidden=128 keeps intermediates lane-dense.
    n_sub, n_agr, n_urb = 64, 48, 40
    in_sub, in_agr, in_urb = 8, 6, 5
    hidden, out_dims, num_layers = 128, 4, 3

    key = jax.random.PRNGKey(0)
    k_xs, k_xa, k_xu, k_es, k_ed, k_ea, k_eu, k_p = jax.random.split(key, 8)

    x_dict = {
        'sub': jax.random.normal(k_xs, (n_sub, in_sub), jnp.float32),
        'agr': jax.random.normal(k_xa, (n_agr, in_agr), jnp.float32),
        'urb': jax.random.normal(k_xu, (n_urb, in_urb), jnp.float32),
    }

    n_e_sub, n_e_agr, n_e_urb = 192, 144, 120
    edge_index_dict = {
        ('sub', 'downstream', 'sub'): jnp.stack([
            jax.random.randint(k_es, (n_e_sub,), 0, n_sub),
            jax.random.randint(k_ed, (n_e_sub,), 0, n_sub)]),
        ('agr', 'downstream_agr', 'sub'): jnp.stack([
            jax.random.randint(k_ea, (n_e_agr,), 0, n_agr),
            jax.random.randint(jax.random.fold_in(k_ea, 1), (n_e_agr,), 0, n_sub)]),
        ('urb', 'downstream_urb', 'sub'): jnp.stack([
            jax.random.randint(k_eu, (n_e_urb,), 0, n_urb),
            jax.random.randint(jax.random.fold_in(k_eu, 1), (n_e_urb,), 0, n_sub)]),
    }

    params_layers, final_w, final_b = init_params(
        k_p, in_sub, in_agr, in_urb, hidden, out_dims, num_layers)

    out = hetero_graph_forward(x_dict, edge_index_dict, params_layers, final_w, final_b)
    out = jax.block_until_ready(out)

    ref_match = reference_forward_matched(
        x_dict, edge_index_dict, params_layers, final_w, final_b)
    ref_exact = reference_forward_exact(
        x_dict, edge_index_dict, params_layers, final_w, final_b)

    assert out.shape == (n_sub, out_dims)
    assert bool(jnp.all(jnp.isfinite(out))), "non-finite output"
    assert jnp.allclose(jnp.sum(out, axis=1), 1.0, atol=1e-4), "softmax rows must sum to 1"
    # Tight check vs. a pure-JAX replica of the same folded / bf16-cast math.
    assert jnp.allclose(out, ref_match, atol=1e-3, rtol=1e-3), \
        "Pallas output mismatch vs bf16-matched reference"
    # Looser check vs. exact f32 unfolded math (bf16 MXU inputs, f32 accumulation).
    assert jnp.allclose(out, ref_exact, atol=3e-2, rtol=3e-2), \
        "Pallas output mismatch vs f32 reference"

    print("KERNEL_OK")
</pallas_src>

<mosaic_0001>
module attributes {stable_mosaic.version = 11 : i64} {
  func.func @kernel(%arg0: memref<64x64xbf16, #tpu.memory_space<vmem>>, %arg1: memref<64x1xf32, #tpu.memory_space<vmem>>, %arg2: memref<64x128xbf16, #tpu.memory_space<vmem>>, %arg3: memref<3x256x128xbf16, #tpu.memory_space<vmem>>, %arg4: memref<3x64x128xbf16, #tpu.memory_space<vmem>>, %arg5: memref<128x128xbf16, #tpu.memory_space<vmem>>, %arg6: memref<1x128xf32, #tpu.memory_space<vmem>>, %arg7: memref<64x128xf32, #tpu.memory_space<vmem>>) attributes {dimension_semantics = [], scalar_prefetch = 0 : i64, scratch_operands = 0 : i64, tpu.core_type = #tpu.core_type<tc>} {
    %c0 = arith.constant 0 : index
    %c0_0 = arith.constant 0 : index
    %0 = vector.load %arg0[%c0, %c0_0] : memref<64x64xbf16, #tpu.memory_space<vmem>>, vector<64x64xbf16>
    %c0_1 = arith.constant 0 : index
    %c0_2 = arith.constant 0 : index
    %1 = vector.load %arg1[%c0_1, %c0_2] : memref<64x1xf32, #tpu.memory_space<vmem>>, vector<64x1xf32>
    %c0_3 = arith.constant 0 : index
    %c0_4 = arith.constant 0 : index
    %2 = vector.load %arg2[%c0_3, %c0_4] : memref<64x128xbf16, #tpu.memory_space<vmem>>, vector<64x128xbf16>
    %cst = arith.constant dense<0.000000e+00> : vector<64x128xf32>
    %3 = tpu.matmul %0, %2, %cst {dimension_numbers = #tpu.dot_dimension_numbers<[1], [0], [0], [1], [0, 0, 1, 1], [], []>} : vector<64x64xbf16>, vector<64x128xbf16>, vector<64x128xf32> -> vector<64x128xf32>
    %4 = arith.truncf %3 : vector<64x128xf32> to vector<64x128xbf16>
    %5 = tpu.concatenate %4, %2 in 1 : vector<64x128xbf16>, vector<64x128xbf16> -> vector<64x256xbf16>
    %c0_5 = arith.constant 0 : index
    %c0_6 = arith.constant 0 : index
    %c0_7 = arith.constant 0 : index
    %6 = vector.load %arg3[%c0_5, %c0_6, %c0_7] : memref<3x256x128xbf16, #tpu.memory_space<vmem>>, vector<1x256x128xbf16>
    %7 = vector.shape_cast %6 : vector<1x256x128xbf16> to vector<256x128xbf16>
    %cst_8 = arith.constant dense<0.000000e+00> : vector<64x128xf32>
    %8 = tpu.matmul %5, %7, %cst_8 {dimension_numbers = #tpu.dot_dimension_numbers<[1], [0], [0], [1], [0, 0, 1, 1], [], []>} : vector<64x256xbf16>, vector<256x128xbf16>, vector<64x128xf32> -> vector<64x128xf32>
    %c0_9 = arith.constant 0 : index
    %c0_10 = arith.constant 0 : index
    %c0_11 = arith.constant 0 : index
    %9 = vector.load %arg4[%c0_9, %c0_10, %c0_11] : memref<3x64x128xbf16, #tpu.memory_space<vmem>>, vector<1x64x128xbf16>
    %10 = vector.shape_cast %9 : vector<1x64x128xbf16> to vector<64x128xbf16>
    %11 = arith.extf %10 : vector<64x128xbf16> to vector<64x128xf32>
    %12 = arith.addf %8, %11 : vector<64x128xf32>
    %cst_12 = arith.constant 0.000000e+00 : f32
    %13 = vector.broadcast %cst_12 : f32 to vector<64x128xf32>
    %14 = arith.maximumf %12, %13 : vector<64x128xf32>
    %15 = arith.truncf %14 : vector<64x128xf32> to vector<64x128xbf16>
    %cst_13 = arith.constant dense<0.000000e+00> : vector<64x128xf32>
    %16 = tpu.matmul %0, %15, %cst_13 {dimension_numbers = #tpu.dot_dimension_numbers<[1], [0], [0], [1], [0, 0, 1, 1], [], []>} : vector<64x64xbf16>, vector<64x128xbf16>, vector<64x128xf32> -> vector<64x128xf32>
    %17 = vector.broadcast %1 : vector<64x1xf32> to vector<64x128xf32>
    %18 = arith.mulf %16, %17 : vector<64x128xf32>
    %19 = arith.truncf %18 : vector<64x128xf32> to vector<64x128xbf16>
    %20 = tpu.concatenate %19, %15 in 1 : vector<64x128xbf16>, vector<64x128xbf16> -> vector<64x256xbf16>
    %c1 = arith.constant 1 : index
    %c0_14 = arith.constant 0 : index
    %c0_15 = arith.constant 0 : index
    %21 = vector.load %arg3[%c1, %c0_14, %c0_15] : memref<3x256x128xbf16, #tpu.memory_space<vmem>>, vector<1x256x128xbf16>
    %22 = vector.shape_cast %21 : vector<1x256x128xbf16> to vector<256x128xbf16>
    %cst_16 = arith.constant dense<0.000000e+00> : vector<64x128xf32>
    %23 = tpu.matmul %20, %22, %cst_16 {dimension_numbers = #tpu.dot_dimension_numbers<[1], [0], [0], [1], [0, 0, 1, 1], [], []>} : vector<64x256xbf16>, vector<256x128xbf16>, vector<64x128xf32> -> vector<64x128xf32>
    %c1_17 = arith.constant 1 : index
    %c0_18 = arith.constant 0 : index
    %c0_19 = arith.constant 0 : index
    %24 = vector.load %arg4[%c1_17, %c0_18, %c0_19] : memref<3x64x128xbf16, #tpu.memory_space<vmem>>, vector<1x64x128xbf16>
    %25 = vector.shape_cast %24 : vector<1x64x128xbf16> to vector<64x128xbf16>
    %26 = arith.extf %25 : vector<64x128xbf16> to vector<64x128xf32>
    %27 = arith.addf %23, %26 : vector<64x128xf32>
    %cst_20 = arith.constant 0.000000e+00 : f32
    %28 = vector.broadcast %cst_20 : f32 to vector<64x128xf32>
    %29 = arith.maximumf %27, %28 : vector<64x128xf32>
    %30 = arith.truncf %29 : vector<64x128xf32> to vector<64x128xbf16>
    %cst_21 = arith.constant dense<0.000000e+00> : vector<64x128xf32>
    %31 = tpu.matmul %0, %30, %cst_21 {dimension_numbers = #tpu.dot_dimension_numbers<[1], [0], [0], [1], [0, 0, 1, 1], [], []>} : vector<64x64xbf16>, vector<64x128xbf16>, vector<64x128xf32> -> vector<64x128xf32>
    %32 = vector.broadcast %1 : vector<64x1xf32> to vector<64x128xf32>
    %33 = arith.mulf %31, %32 : vector<64x128xf32>
    %34 = arith.truncf %33 : vector<64x128xf32> to vector<64x128xbf16>
    %35 = tpu.concatenate %34, %30 in 1 : vector<64x128xbf16>, vector<64x128xbf16> -> vector<64x256xbf16>
    %c2 = arith.constant 2 : index
    %c0_22 = arith.constant 0 : index
    %c0_23 = arith.constant 0 : index
    %36 = vector.load %arg3[%c2, %c0_22, %c0_23] : memref<3x256x128xbf16, #tpu.memory_space<vmem>>, vector<1x256x128xbf16>
    %37 = vector.shape_cast %36 : vector<1x256x128xbf16> to vector<256x128xbf16>
    %cst_24 = arith.constant dense<0.000000e+00> : vector<64x128xf32>
    %38 = tpu.matmul %35, %37, %cst_24 {dimension_numbers = #tpu.dot_dimension_numbers<[1], [0], [0], [1], [0, 0, 1, 1], [], []>} : vector<64x256xbf16>, vector<256x128xbf16>, vector<64x128xf32> -> vector<64x128xf32>
    %c2_25 = arith.constant 2 : index
    %c0_26 = arith.constant 0 : index
    %c0_27 = arith.constant 0 : index
    %39 = vector.load %arg4[%c2_25, %c0_26, %c0_27] : memref<3x64x128xbf16, #tpu.memory_space<vmem>>, vector<1x64x128xbf16>
    %40 = vector.shape_cast %39 : vector<1x64x128xbf16> to vector<64x128xbf16>
    %41 = arith.extf %40 : vector<64x128xbf16> to vector<64x128xf32>
    %42 = arith.addf %38, %41 : vector<64x128xf32>
    %cst_28 = arith.constant 0.000000e+00 : f32
    %43 = vector.broadcast %cst_28 : f32 to vector<64x128xf32>
    %44 = arith.maximumf %42, %43 : vector<64x128xf32>
    %45 = arith.truncf %44 : vector<64x128xf32> to vector<64x128xbf16>
    %c0_29 = arith.constant 0 : index
    %c0_30 = arith.constant 0 : index
    %46 = vector.load %arg5[%c0_29, %c0_30] : memref<128x128xbf16, #tpu.memory_space<vmem>>, vector<128x128xbf16>
    %cst_31 = arith.constant dense<0.000000e+00> : vector<64x128xf32>
    %47 = tpu.matmul %45, %46, %cst_31 {dimension_numbers = #tpu.dot_dimension_numbers<[1], [0], [0], [1], [0, 0, 1, 1], [], []>} : vector<64x128xbf16>, vector<128x128xbf16>, vector<64x128xf32> -> vector<64x128xf32>
    %c0_32 = arith.constant 0 : index
    %c0_33 = arith.constant 0 : index
    %48 = vector.load %arg6[%c0_32, %c0_33] : memref<1x128xf32, #tpu.memory_space<vmem>>, vector<1x128xf32>
    %49 = vector.broadcast %48 : vector<1x128xf32> to vector<64x128xf32>
    %50 = arith.addf %47, %49 : vector<64x128xf32>
    %cst_34 = arith.constant dense<0xFF800000> : vector<64xf32>
    %51 = vector.multi_reduction <maximumf>, %50, %cst_34 [1] : vector<64x128xf32> to vector<64xf32>
    %52 = vector.shape_cast %51 : vector<64xf32> to vector<64x1xf32>
    %53 = vector.broadcast %52 : vector<64x1xf32> to vector<64x128xf32>
    %54 = arith.subf %50, %53 : vector<64x128xf32>
    %55 = math.exp %54 : vector<64x128xf32>
    %cst_35 = arith.constant dense<0.000000e+00> : vector<64xf32>
    %56 = vector.multi_reduction <add>, %55, %cst_35 [1] : vector<64x128xf32> to vector<64xf32>
    %57 = vector.shape_cast %56 : vector<64xf32> to vector<64x1xf32>
    %58 = tpu.reciprocal %57 : vector<64x1xf32> -> vector<64x1xf32>
    %59 = vector.broadcast %58 : vector<64x1xf32> to vector<64x128xf32>
    %60 = arith.mulf %55, %59 : vector<64x128xf32>
    %c0_36 = arith.constant 0 : index
    %c0_37 = arith.constant 0 : index
    %61 = vector.load %arg7[%c0_36, %c0_37] : memref<64x128xf32, #tpu.memory_space<vmem>>, vector<64x128xf32>
    tpu.vector_store %arg7[%c0_36, %c0_37], %60 {strides = array<i32>} : memref<64x128xf32, #tpu.memory_space<vmem>>, vector<64x128xf32>,
    return
  }
}

</mosaic_0001>

<bundles_post_ra>
// kernel: tpu_custom_call.1
= control target key start
LH: loop header
LB: loop body
LE: loop exit
PB: predicated region body
PF: predicated region fallthrough
CT: control target
= control target key end

     0   :  { %12 = vsyncpa [#allocation3], 0  ;;  %s2188_s0 = inlined_call_operand.hbm [shape: bf16[64,64], index: 0, kind: input, shape index: {}]   ;;  %s2189_s1 = inlined_call_operand.vmem [shape: f32[64,1], index: 1, kind: input, shape index: {}]   ;;  %s2190_s2 = inlined_call_operand.hbm [shape: bf16[64,128], index: 2, kind: input, shape index: {}]   ;;  %s2191_s3 = inlined_call_operand.hbm [shape: bf16[3,256,128], index: 3, kind: input, shape index: {}]   ;;  %s2192_s4 = inlined_call_operand.hbm [shape: bf16[3,64,128], index: 4, kind: input, shape index: {}]   ;;  %s2193_s5 = inlined_call_operand.vmem [shape: bf16[128,128], index: 5, kind: input, shape index: {}]   ;;  %s2194_s6 = inlined_call_operand.vmem [shape: f32[1,128], index: 6, kind: input, shape index: {}]   ;;  %s2195_s7 = inlined_call_operand.hbm [shape: f32[64,128], index: 7, kind: output, shape index: {}]  }
   0x1   :  { %13 = vsyncpa [#allocation6], 0 }
   0x2   :  { %14 = vsyncpa [#allocation9], 0 }
   0x3   :  { %15 = vsyncpa [#allocation4], 0  ;;  %s1917_s24 = smov [#allocation5]   ;;  %s1918_s26 = smov [#allocation2]  }
   0x4   :  { %s35_s25 = sshll.u32 %s1917_s24, 4  ;;  %s21_s27 = sshll.u32 %s1918_s26, 4  ;;  %s36_s25 = int_to_ptr.vmem [resolvable:$true] %s35_s25  ;;  %s1967_s27 = int_to_ptr.vmem [resolvable:$true] %s21_s27 }
   0x5   :  { %s1799_s30 = scalar_lea.hbm %s2190_s2, 512 }
   0x6   :  { %p1800_p0 = scmp.ne.s32.totalorder %s2190_s2, %s1799_s30  ;;  %p1803_p1 = scmp.lt.u32.totalorder %s1799_s30, %s2190_s2 }
   0x8   :  { %p1805_p2 = pnand %p1803_p1, %p1800_p0 }
   0xa   :  { %1808 = shalt.err (!%p1805_p2)
}
   0xb   :  { %s1809_s12 = scalar_lea.vmem %s36_s25, 512  ;;  %p1814_p4 = scmp.lt.s32.totalorder %s36_s25, %s36_s25 }
   0xc   :  { %p1810_p3 = scmp.ne.s32.totalorder %s36_s25, %s1809_s12  ;;  %p1815_p5 = scmp.lt.s32.totalorder %s1809_s12, %s1809_s12 }
   0xe   :  { %p1816_p6 = por %p1815_p5, %p1814_p4 }
  0x10   :  { %p1817_p7 = pnand %p1816_p6, %p1810_p3 }
  0x12   :  { %1820 = shalt.err (!%p1817_p7)
}
  0x13   :  { %s1919_s13 = smov 64   ;;  %s1920_s14 = smov 4  }
  0x14   :  { %41 = dma.hbm_to_vmem [thread:$0]  %s2190_s2, 512, %s36_s25, [#allocation6], %s1919_s13, %s1919_s13, %s1920_s14  }
  0x15   :  { %s1821_s19 = scalar_lea.hbm %s2188_s0, 512 }
  0x16   :  { %p1822_p8 = scmp.ne.s32.totalorder %s2188_s0, %s1821_s19  ;;  %p1825_p9 = scmp.lt.u32.totalorder %s1821_s19, %s2188_s0 }
  0x18   :  { %p1827_p10 = pnand %p1825_p9, %p1822_p8 }
  0x1a   :  { %1830 = shalt.err (!%p1827_p10)
}
  0x1b   :  { %s1831_s24 = scalar_lea.vmem %s1967_s27, 512  ;;  %p1836_p12 = scmp.lt.s32.totalorder %s1967_s27, %s1967_s27 }
  0x1c   :  { %p1832_p11 = scmp.ne.s32.totalorder %s1967_s27, %s1831_s24  ;;  %p1837_p13 = scmp.lt.s32.totalorder %s1831_s24, %s1831_s24 }
  0x1e   :  { %p1838_p0 = por %p1837_p13, %p1836_p12 }
  0x20   :  { %p1839_p1 = pnand %p1838_p0, %p1832_p11 }
  0x22   :  { %1842 = shalt.err (!%p1839_p1)
}
  0x23   :  { %27 = dma.hbm_to_vmem [thread:$0]  %s2188_s0, 512, %s1967_s27, [#allocation3], %s1919_s13, %s1919_s13, %s1920_s14  }
  0x24   :  { %s1921_s26 = smov [#allocation7]   ;;  %s1922_s29 = smov [#allocation8]  }
  0x25   :  { %s47_s28 = sshll.u32 %s1921_s26, 4  ;;  %s59_s30 = sshll.u32 %s1922_s29, 4  ;;  %s48_s28 = int_to_ptr.vmem [resolvable:$true] %s47_s28  ;;  %s2004_s30 = int_to_ptr.vmem [resolvable:$true] %s59_s30 }
  0x26   :  { %s1843_s10 = scalar_lea.hbm %s2191_s3, 6144 }
  0x27   :  { %p1844_p2 = scmp.ne.s32.totalorder %s2191_s3, %s1843_s10  ;;  %p1847_p3 = scmp.lt.u32.totalorder %s1843_s10, %s2191_s3 }
  0x29   :  { %p1849_p4 = pnand %p1847_p3, %p1844_p2 }
  0x2b   :  { %1852 = shalt.err (!%p1849_p4)
}
  0x2c   :  { %s1853_s0 = scalar_lea.vmem %s48_s28, 6144  ;;  %p1858_p6 = scmp.lt.s32.totalorder %s48_s28, %s48_s28 }
  0x2d   :  { %p1854_p5 = scmp.ne.s32.totalorder %s48_s28, %s1853_s0  ;;  %p1859_p7 = scmp.lt.s32.totalorder %s1853_s0, %s1853_s0 }
  0x2f   :  { %p1860_p8 = por %p1859_p7, %p1858_p6 }
  0x31   :  { %p1861_p9 = pnand %p1860_p8, %p1854_p5 }
  0x33   :  { %1864 = shalt.err (!%p1861_p9)
}
  0x34   :  { %53 = dma.hbm_to_vmem [thread:$0]  %s2191_s3, 6144, %s48_s28, [#allocation6], %s1919_s13, %s1919_s13, %s1920_s14  }
  0x35   :  { %s1865_s20 = scalar_lea.hbm %s2192_s4, 1536 }
  0x36   :  { %p1866_p10 = scmp.ne.s32.totalorder %s2192_s4, %s1865_s20  ;;  %p1869_p11 = scmp.lt.u32.totalorder %s1865_s20, %s2192_s4 }
  0x38   :  { %p1871_p12 = pnand %p1869_p11, %p1866_p10 }
  0x3a   :  { %1874 = shalt.err (!%p1871_p12)
}
  0x3b   :  { %s1875_s2 = scalar_lea.vmem %s2004_s30, 1536  ;;  %p1880_p0 = scmp.lt.s32.totalorder %s2004_s30, %s2004_s30 }
  0x3c   :  { %p1876_p13 = scmp.ne.s32.totalorder %s2004_s30, %s1875_s2  ;;  %p1881_p1 = scmp.lt.s32.totalorder %s1875_s2, %s1875_s2 }
  0x3e   :  { %p1882_p2 = por %p1881_p1, %p1880_p0 }
  0x40   :  { %p1883_p3 = pnand %p1882_p2, %p1876_p13 }
  0x42   :  { %1886 = shalt.err (!%p1883_p3)
}
  0x43   :  { %65 = dma.hbm_to_vmem [thread:$0]  %s2192_s4, 1536, %s2004_s30, [#allocation9], %s1919_s13, %s1919_s13, %s1920_s14  }
  0x44   :  { %1909 = dma.done.wait [#allocation3], 512  }
  0x45   :  { %1910 = vsyncadd [#allocation3], 4294966784 }
  0x46   :  { %1911 = dma.done.wait [#allocation6], 6656  }
  0x47   :  { %1912 = vsyncadd [#allocation6], 4294960640 }
  0x48   :  { %1913 = dma.done.wait [#allocation9], 1536  }
  0x49   :  { %1914 = vsyncadd [#allocation9], 4294965760  ;;  %v1703_v0 = vld [vmem:[#allocation5] sm:$0xff]   ;;  %v1704_v1 = vld [vmem:[#allocation5 + $0x8] sm:$0xff]   ;;  %vm151_vm0 = vcmask 523264   ;;  %v1923_v38 = vmov 0  }
  0x4a   :  { %1619 = vmatprep.subr.bf16.mxu0 %v1703_v0  ;;  %409 = vmatprep.mubr.bf16.mxu1 %v1703_v0  ;;  %v2041_v2 = vld [vmem:[#allocation5 + $0x10] sm:$0xff]   ;;  %v2043_v3 = vld [vmem:[#allocation2] sm:$0xff]   ;;  %v1706_v4 = vld [vmem:[#allocation5 + $0x18] sm:$0xff]  }
  0x4b   :  { %1620 = vmatpush3.bf16.msra.mxu0 %v1703_v0  ;;  %1627 = vmatprep.mubr.msk.bf16.mxu0 %vm151_vm0, %v2043_v3  ;;  %v1711_v5 = vld [vmem:[#allocation7 + $0x40] sm:$0xff]   ;;  %v1713_v7 = vld [vmem:[#allocation7 + $0x48] sm:$0xff]   ;;  %v1715_v9 = vld [vmem:[#allocation7 + $0x50] sm:$0xff]  }
  0x4c   :  { %1621 = vmatprep.subr.bf16.mxu0 %v1704_v1  ;;  %v1712_v6 = vld [vmem:[#allocation7] sm:$0xff]   ;;  %1471 = vmatprep.subr.bf16.mxu1 %v1711_v5  ;;  %v1714_v8 = vld [vmem:[#allocation7 + $0x8] sm:$0xff]   ;;  %v2051_v11 = vld [vmem:[#allocation2 + $0x10] sm:$0xff]  }
  0x4d   :  { %1472 = vmatpush3.bf16.msra.mxu1 %v1712_v6  ;;  %v2049_v10 = vld [vmem:[#allocation2 + $0x8] sm:$0xff]   ;;  %v1716_v12 = vld [vmem:[#allocation7 + $0x10] sm:$0xff]   ;;  %v1717_v13 = vld [vmem:[#allocation7 + $0x58] sm:$0xff]   ;;  %1701 = vset.pattern.permute.xlu0 %v1923_v38 }
  0x4e   :  { %1473 = vmatprep.subr.bf16.mxu1 %v1713_v7  ;;  %v1718_v14 = vld [vmem:[#allocation7 + $0x18] sm:$0xff]   ;;  %v1719_v16 = vld [vmem:[#allocation7 + $0x60] sm:$0xff]   ;;  %v1721_v18 = vld [vmem:[#allocation7 + $0x68] sm:$0xff]   ;;  %1702 = vset.pattern.permute.xlu1 %v1923_v38 }
  0x4f   :  { %1622 = vmatpush3.bf16.msra.mxu0 %v1704_v1  ;;  %v2057_v15 = vld [vmem:[#allocation2 + $0x18] sm:$0xff]   ;;  %v1720_v17 = vld [vmem:[#allocation7 + $0x20] sm:$0xff]   ;;  %v1722_v19 = vld [vmem:[#allocation7 + $0x28] sm:$0xff]  }
  0x50   :  { %1623 = vmatprep.subr.bf16.mxu0 %v2041_v2  ;;  %v1723_v20 = vld [vmem:[#allocation7 + $0x70] sm:$0xff]   ;;  %v1725_v22 = vld [vmem:[#allocation7 + $0x78] sm:$0xff]   ;;  %v91_v36 = vld [vmem:[%s2189_s1] sm:$0xff] }
  0x51   :  { %1474 = vmatpush3.bf16.msra.mxu1 %v1714_v8  ;;  %v1724_v21 = vld [vmem:[#allocation7 + $0x30] sm:$0xff]   ;;  %v1726_v23 = vld [vmem:[#allocation7 + $0x38] sm:$0xff]   ;;  %521 = vperm.xlu0 %1701, %v91_v36   ;;  %v92_v39 = vld [vmem:[%s2189_s1 + $0x8] sm:$0xff] }
  0x52   :  { %1475 = vmatprep.subr.bf16.mxu1 %v1715_v9  ;;  %v93_v37 = vld [vmem:[%s2189_s1 + $0x10] sm:$0xff]  ;;  %v94_v40 = vld [vmem:[%s2189_s1 + $0x18] sm:$0xff]  ;;  %v95_v41 = vld [vmem:[%s2189_s1 + $0x20] sm:$0xff] }
  0x53   :  { %1624 = vmatpush3.bf16.msra.mxu0 %v2041_v2  ;;  %531 = vperm.xlu1 %1702, %v93_v37   ;;  %v96_v42 = vld [vmem:[%s2189_s1 + $0x28] sm:$0xff]  ;;  %v97_v43 = vld [vmem:[%s2189_s1 + $0x30] sm:$0xff]  ;;  %v98_v44 = vld [vmem:[%s2189_s1 + $0x38] sm:$0xff] }
  0x54   :  { %1625 = vmatprep.subr.bf16.mxu0 %v1706_v4  ;;  %v1407_v45 = vld [vmem:[#allocation8] sm:$0xff]   ;;  %v1454_v55 = vld [vmem:[#allocation8 + $0x8] sm:$0xff]   ;;  %v1455_v5 = vld [vmem:[#allocation8 + $0x10] sm:$0xff]  }
  0x55   :  { %1476 = vmatpush3.bf16.msra.mxu1 %v1716_v12  ;;  %526 = vperm.xlu0 %1701, %v92_v39   ;;  %v1408_v47 = vunpack.c.l.bf16 %v1407_v45  ;;  %v1409_v51 = vunpack.c.h.bf16 %v1407_v45  ;;  %v1412_v60 = vunpack.c.l.bf16 %v1454_v55  ;;  %v1413_v0 = vunpack.c.h.bf16 %v1454_v55  ;;  %v1732_v45 = vld [vmem:[#allocation7 + $0x90] sm:$0xff]   ;;  %v1742_v55 = vld [vmem:[#allocation7 + $0xb8] sm:$0xff]  }
  0x56   :  { %1477 = vmatprep.subr.bf16.mxu1 %v1717_v13  ;;  %v1416_v12 = vunpack.c.l.bf16 %v1455_v5 }
  0x57   :  { %1626 = vmatpush3.bf16.msra.mxu0 %v1706_v4  ;;  %536 = vperm.xlu1 %1702, %v94_v40   ;;  %v1727_v40 = vld [vmem:[#allocation7 + $0xc0] sm:$0xff]  }
  0x59   :  { %1478 = vmatpush3.bf16.msra.mxu1 %v1718_v14  ;;  %541 = vperm.xlu0 %1701, %v95_v41   ;;  %v1728_v41 = vld [vmem:[#allocation7 + $0x80] sm:$0xff]  }
  0x5a   :  { %1628 = vmatmul.mubr.msk.bf16.vlgmr.msra.gmra.mrb[0].mxu0 %vm151_vm0, %v2049_v10  ;;  %1479 = vmatprep.subr.bf16.mxu1 %v1719_v16 }
  0x5b   :  { %1631 = vmatprep.mubr.msk.bf16.mxu0 %vm151_vm0, %v2051_v11  ;;  %546 = vperm.xlu1 %1702, %v96_v42   ;;  %v1729_v42 = vld [vmem:[#allocation7 + $0xc8] sm:$0xff]  }
  0x5d   :  { %1480 = vmatpush3.bf16.msra.mxu1 %v1720_v17  ;;  %551 = vperm.xlu0 %1701, %v97_v43   ;;  %v1417_v17 = vunpack.c.h.bf16 %v1455_v5  ;;  %v1730_v43 = vld [vmem:[#allocation7 + $0x88] sm:$0xff]  }
  0x5e   :  { %1481 = vmatprep.subr.bf16.mxu1 %v1721_v18 }
  0x5f   :  { %556 = vperm.xlu1 %1702, %v98_v44   ;;  %v1731_v44 = vld [vmem:[#allocation7 + $0xd0] sm:$0xff]  }
  0x61   :  { %1482 = vmatpush3.bf16.msra.mxu1 %v1722_v19 }
  0x62   :  { %1632 = vmatmul.mubr.msk.bf16.gmra.mrb[4].mxu0 %vm151_vm0, %v2057_v15  ;;  %1483 = vmatprep.subr.bf16.mxu1 %v1723_v20 }
  0x63   :  { %1643 = vmatprep.mubr.msk.bf16.mxu0 %vm151_vm0, %v2043_v3 }
  0x65   :  { %1484 = vmatpush3.bf16.msra.mxu1 %v1724_v21 }
  0x66   :  { %1485 = vmatprep.subr.bf16.mxu1 %v1725_v22  ;;  %v1456_v22 = vld [vmem:[#allocation8 + $0x18] sm:$0xff]  }
  0x69   :  { %1486 = vmatpush3.bf16.msra.mxu1 %v1726_v23 }
 0x12d   :  { %v1629_v24 = vpop.f32.mrb[0].mxu0 }
 0x12e   :  { %v198_v25 = vpop.f32.mrb[1].mxu0 }
 0x12f   :  { %v1630_v26 = vpop.f32.mrb[2].mxu0 }
 0x130   :  { %v230_v27 = vpack.c.bf16 %v1630_v26, %v1629_v24  ;;  %v201_v28 = vpop.f32.mrb[3].mxu0 }
 0x131   :  { %v229_v29 = vpack.c.bf16 %v201_v28, %v198_v25 }
 0x133   :  { %410 = vmatmul.mubr.bf16.vlgmr.msra.gmra.mrb[0].mxu1 %v229_v29 }
 0x134   :  { %417 = vmatprep.mubr.bf16.mxu1 %v1704_v1 }
 0x135   :  { %v1633_v30 = vpop.f32.mrb[4].mxu0 }
 0x136   :  { %v214_v31 = vpop.f32.mrb[5].mxu0 }
 0x137   :  { %v1634_v32 = vpop.f32.mrb[6].mxu0 }
 0x138   :  { %v232_v33 = vpack.c.bf16 %v1634_v32, %v1633_v30  ;;  %v217_v34 = vpop.f32.mrb[7].mxu0 }
 0x139   :  { %v231_v35 = vpack.c.bf16 %v217_v34, %v214_v31  ;;  %v1421_v31 = vunpack.c.h.bf16 %v1456_v22 }
 0x13b   :  { %418 = vmatmul.mubr.bf16.gmra.mrb[4].mxu1 %v230_v27  ;;  %v1420_v27 = vunpack.c.l.bf16 %v1456_v22 }
 0x13c   :  { %425 = vmatprep.mubr.bf16.mxu1 %v2041_v2 }
 0x143   :  { %426 = vmatmul.mubr.bf16.gmra.mrb[8].mxu1 %v231_v35 }
 0x144   :  { %433 = vmatprep.mubr.bf16.mxu1 %v1706_v4 }
 0x14b   :  { %434 = vmatmul.mubr.bf16.gmra.mrb[12].mxu1 %v232_v33 }
 0x14c   :  { %1659 = vmatprep.mubr.msk.bf16.mxu1 %vm151_vm0, %v2043_v3 }
 0x206   :  { %v1487_v46 = vpop.f32.mrb[0].mxu1 }
 0x207   :  { %v1488_v48 = vpop.f32.mrb[1].mxu1 }
 0x208   :  { %v1489_v49 = vadd.f32 %v1488_v48, %v1487_v46  ;;  %v1490_v50 = vpop.f32.mrb[2].mxu1  ;;  %v1733_v46 = vld [vmem:[#allocation7 + $0xd8] sm:$0xff]   ;;  %v1735_v48 = vld [vmem:[#allocation7 + $0xe0] sm:$0xff]  }
 0x209   :  { %v1491_v52 = vpop.f32.mrb[3].mxu1 }
 0x20a   :  { %v412_v53 = vadd.f32 %v1489_v49, %v1408_v47  ;;  %v1492_v54 = vadd.f32 %v1491_v52, %v1490_v50  ;;  %v1734_v47 = vld [vmem:[#allocation7 + $0x98] sm:$0xff]   ;;  %v1736_v49 = vld [vmem:[#allocation7 + $0xa0] sm:$0xff]   ;;  %v1737_v50 = vld [vmem:[#allocation7 + $0xe8] sm:$0xff]  }
 0x20b   :  { %v1739_v52 = vld [vmem:[#allocation7 + $0xf0] sm:$0xff]  }
 0x20c   :  { %v415_v56 = vadd.f32 %v1492_v54, %v1409_v51  ;;  %v442_v57 = vmax.f32 %v412_v53, 0.0  ;;  %v1738_v51 = vld [vmem:[#allocation7 + $0xa8] sm:$0xff]   ;;  %v1740_v53 = vld [vmem:[#allocation7 + $0xb0] sm:$0xff]   ;;  %v1741_v54 = vld [vmem:[#allocation7 + $0xf8] sm:$0xff]  }
 0x20e   :  { %v443_v58 = vmax.f32 %v415_v56, 0.0  ;;  %v1493_v59 = vpop.f32.mrb[4].mxu1  ;;  %v2108_v56 = vpop.permute.xlu0 %521 }
 0x20f   :  { %v1494_v61 = vpop.f32.mrb[5].mxu1 }
 0x210   :  { %v1495_v62 = vadd.f32 %v1494_v61, %v1493_v59  ;;  %v1496_v63 = vpop.f32.mrb[6].mxu1  ;;  %v450_v1 = vpack.c.bf16 %v443_v58, %v442_v57  ;;  %v2110_v57 = vpop.permute.xlu1 %531 }
 0x211   :  { %v1497_v2 = vpop.f32.mrb[7].mxu1 }
 0x212   :  { %v420_v3 = vadd.f32 %v1495_v62, %v1412_v60  ;;  %v1498_v4 = vadd.f32 %v1497_v2, %v1496_v63  ;;  %1635 = vmatprep.subr.bf16.mxu0 %v450_v1  ;;  %v2112_v58 = vpop.permute.xlu0 %526 }
 0x213   :  { %1636 = vmatpush3.bf16.msra.mxu0 %v450_v1 }
 0x214   :  { %v423_v6 = vadd.f32 %v1498_v4, %v1413_v0  ;;  %v444_v7 = vmax.f32 %v420_v3, 0.0  ;;  %v2114_v59 = vpop.permute.xlu1 %536 }
 0x216   :  { %v445_v8 = vmax.f32 %v423_v6, 0.0  ;;  %v1499_v9 = vpop.f32.mrb[8].mxu1  ;;  %v2116_v63 = vpop.permute.xlu0 %541 }
 0x217   :  { %v1500_v13 = vpop.f32.mrb[9].mxu1 }
 0x218   :  { %v1501_v14 = vadd.f32 %v1500_v13, %v1499_v9  ;;  %v1502_v16 = vpop.f32.mrb[10].mxu1  ;;  %v2090_v18 = vpack.c.bf16 %v445_v8, %v444_v7  ;;  %v2121_v4 = vpop.permute.xlu1 %546 }
 0x219   :  { %v1503_v19 = vpop.f32.mrb[11].mxu1 }
 0x21a   :  { %v428_v20 = vadd.f32 %v1501_v14, %v1416_v12  ;;  %v1504_v21 = vadd.f32 %v1503_v19, %v1502_v16  ;;  %1637 = vmatprep.subr.bf16.mxu0 %v2090_v18  ;;  %v2124_v9 = vpop.permute.xlu0 %551 }
 0x21b   :  { %1638 = vmatpush3.bf16.msra.mxu0 %v2090_v18 }
 0x21c   :  { %v431_v23 = vadd.f32 %v1504_v21, %v1417_v17  ;;  %v446_v24 = vmax.f32 %v428_v20, 0.0  ;;  %v2127_v13 = vpop.permute.xlu1 %556 }
 0x21e   :  { %v447_v25 = vmax.f32 %v431_v23, 0.0  ;;  %v1505_v26 = vpop.f32.mrb[12].mxu1 }
 0x21f   :  { %v1506_v28 = vpop.f32.mrb[13].mxu1 }
 0x220   :  { %v1507_v29 = vadd.f32 %v1506_v28, %v1505_v26  ;;  %v1508_v30 = vpop.f32.mrb[14].mxu1  ;;  %v2094_v32 = vpack.c.bf16 %v447_v25, %v446_v24  ;;  %v1744_v24 = vld [vmem:[#allocation7 + $0x100] sm:$0xff]   ;;  %v1745_v25 = vld [vmem:[#allocation7 + $0x148] sm:$0xff]   ;;  %v1748_v28 = vld [vmem:[#allocation7 + $0x110] sm:$0xff]  }
 0x221   :  { %v1509_v33 = vpop.f32.mrb[15].mxu1  ;;  %v1746_v26 = vld [vmem:[#allocation7 + $0x108] sm:$0xff]  }
 0x222   :  { %v436_v34 = vadd.f32 %v1507_v29, %v1420_v27  ;;  %v1510_v35 = vadd.f32 %v1509_v33, %v1508_v30  ;;  %1639 = vmatprep.subr.bf16.mxu0 %v2094_v32  ;;  %v1747_v27 = vld [vmem:[#allocation7 + $0x150] sm:$0xff]   ;;  %v1749_v29 = vld [vmem:[#allocation7 + $0x158] sm:$0xff]   ;;  %v1753_v33 = vld [vmem:[#allocation7 + $0x168] sm:$0xff]  }
 0x223   :  { %1640 = vmatpush3.bf16.msra.mxu0 %v2094_v32  ;;  %v1750_v30 = vld [vmem:[#allocation7 + $0x118] sm:$0xff]  }
 0x224   :  { %v439_v36 = vadd.f32 %v1510_v35, %v1421_v31  ;;  %v448_v37 = vmax.f32 %v436_v34, 0.0  ;;  %v1751_v31 = vld [vmem:[#allocation7 + $0x160] sm:$0xff]   ;;  %v1754_v34 = vld [vmem:[#allocation7 + $0x128] sm:$0xff]  }
 0x225   :  { %v1423_v35 = vld [vmem:[#allocation8 + $0x20] sm:$0xff]  }
 0x226   :  { %v449_v38 = vmax.f32 %v439_v36, 0.0 }
 0x228   :  { %v2098_v39 = vpack.c.bf16 %v449_v38, %v448_v37  ;;  %v1424_v37 = vunpack.c.l.bf16 %v1423_v35 }
 0x22a   :  { %1641 = vmatprep.subr.bf16.mxu0 %v2098_v39 }
 0x22b   :  { %1642 = vmatpush3.bf16.msra.mxu0 %v2098_v39 }
 0x22c   :  { %1519 = vmatprep.subr.bf16.mxu0 %v1727_v40 }
 0x22e   :  { %1644 = vmatmul.mubr.msk.bf16.vlgmr.msra.gmra.mrb[8].mxu0 %vm151_vm0, %v2049_v10 }
 0x22f   :  { %1647 = vmatprep.mubr.msk.bf16.mxu0 %vm151_vm0, %v2051_v11  ;;  %1520 = vmatpush3.bf16.msra.mxu0 %v1728_v41  ;;  %v1425_v41 = vunpack.c.h.bf16 %v1423_v35 }
 0x230   :  { %1521 = vmatprep.subr.bf16.mxu0 %v1729_v42 }
 0x233   :  { %1522 = vmatpush3.bf16.msra.mxu0 %v1730_v43 }
 0x234   :  { %1523 = vmatprep.subr.bf16.mxu0 %v1731_v44 }
 0x236   :  { %1648 = vmatmul.mubr.msk.bf16.gmra.mrb[12].mxu0 %vm151_vm0, %v2057_v15 }
 0x237   :  { %749 = vmatprep.mubr.bf16.mxu0 %v450_v1  ;;  %1524 = vmatpush3.bf16.msra.mxu0 %v1732_v45  ;;  %v1457_v45 = vld [vmem:[#allocation8 + $0x28] sm:$0xff]  }
 0x238   :  { %1525 = vmatprep.subr.bf16.mxu0 %v1733_v46 }
 0x23b   :  { %1526 = vmatpush3.bf16.msra.mxu0 %v1734_v47 }
 0x23c   :  { %1527 = vmatprep.subr.bf16.mxu0 %v1735_v48 }
 0x23f   :  { %1528 = vmatpush3.bf16.msra.mxu0 %v1736_v49 }
 0x240   :  { %1529 = vmatprep.subr.bf16.mxu0 %v1737_v50  ;;  %v1428_v50 = vunpack.c.l.bf16 %v1457_v45 }
 0x243   :  { %1530 = vmatpush3.bf16.msra.mxu0 %v1738_v51 }
 0x244   :  { %1531 = vmatprep.subr.bf16.mxu0 %v1739_v52 }
 0x247   :  { %1532 = vmatpush3.bf16.msra.mxu0 %v1740_v53 }
 0x248   :  { %1533 = vmatprep.subr.bf16.mxu0 %v1741_v54  ;;  %v1429_v54 = vunpack.c.h.bf16 %v1457_v45 }
 0x24b   :  { %1534 = vmatpush3.bf16.msra.mxu0 %v1742_v55 }
 0x301   :  { %v1645_v60 = vpop.f32.mrb[8].mxu0 }
 0x302   :  { %v488_v61 = vpop.f32.mrb[9].mxu0  ;;  %v561_v0 = vmul.f32 %v1645_v60, %v2110_v57 }
 0x303   :  { %v1646_v62 = vpop.f32.mrb[10].mxu0  ;;  %v559_v3 = vmul.f32 %v2108_v56, %v488_v61 }
 0x304   :  { %v562_v1 = vmul.f32 %v1646_v62, %v2114_v59  ;;  %v491_v2 = vpop.f32.mrb[11].mxu0 }
 0x305   :  { %v560_v5 = vmul.f32 %v2112_v58, %v491_v2 }
 0x306   :  { %v568_v6 = vpack.c.bf16 %v562_v1, %v561_v0  ;;  %v1458_v0 = vld [vmem:[#allocation8 + $0x30] sm:$0xff]  }
 0x307   :  { %v567_v7 = vpack.c.bf16 %v560_v5, %v559_v3 }
 0x309   :  { %v1649_v8 = vpop.f32.mrb[12].mxu0  ;;  %750 = vmatmul.mubr.bf16.vlgmr.msra.gmra.mrb[16].mxu0 %v567_v7 }
 0x30a   :  { %v504_v12 = vpop.f32.mrb[13].mxu0  ;;  %757 = vmatprep.mubr.bf16.mxu0 %v2090_v18  ;;  %v565_v16 = vmul.f32 %v1649_v8, %v2124_v9  ;;  %v1743_v18 = vld [vmem:[#allocation7 + $0x140] sm:$0xff]  }
 0x30b   :  { %v1650_v14 = vpop.f32.mrb[14].mxu0  ;;  %v563_v20 = vmul.f32 %v2116_v63, %v504_v12  ;;  %1567 = vmatprep.subr.bf16.mxu0 %v1743_v18 }
 0x30c   :  { %v566_v17 = vmul.f32 %v1650_v14, %v2127_v13  ;;  %v507_v19 = vpop.f32.mrb[15].mxu0  ;;  %1568 = vmatpush3.bf16.msra.mxu0 %v1744_v24  ;;  %v1433_v14 = vunpack.c.h.bf16 %v1458_v0 }
 0x30d   :  { %v564_v21 = vmul.f32 %v2121_v4, %v507_v19  ;;  %1569 = vmatprep.subr.bf16.mxu0 %v1745_v25 }
 0x30e   :  { %v570_v22 = vpack.c.bf16 %v566_v17, %v565_v16 }
 0x30f   :  { %v569_v23 = vpack.c.bf16 %v564_v21, %v563_v20  ;;  %v1459_v21 = vld [vmem:[#allocation8 + $0x38] sm:$0xff]  }
 0x310   :  { %1570 = vmatpush3.bf16.msra.mxu0 %v1746_v26  ;;  %v1436_v25 = vunpack.c.l.bf16 %v1459_v21 }
 0x311   :  { %758 = vmatmul.mubr.bf16.gmra.mrb[20].mxu0 %v568_v6  ;;  %1571 = vmatprep.subr.bf16.mxu0 %v1747_v27  ;;  %v1432_v6 = vunpack.c.l.bf16 %v1458_v0  ;;  %v1439_v0 = vld [vmem:[#allocation8 + $0x40] sm:$0xff]  }
 0x312   :  { %765 = vmatprep.mubr.bf16.mxu0 %v2094_v32  ;;  %v1752_v32 = vld [vmem:[#allocation7 + $0x120] sm:$0xff]  }
 0x314   :  { %1572 = vmatpush3.bf16.msra.mxu0 %v1748_v28 }
 0x315   :  { %1573 = vmatprep.subr.bf16.mxu0 %v1749_v29  ;;  %v1437_v29 = vunpack.c.h.bf16 %v1459_v21 }
 0x318   :  { %1574 = vmatpush3.bf16.msra.mxu0 %v1750_v30 }
 0x319   :  { %766 = vmatmul.mubr.bf16.gmra.mrb[24].mxu0 %v569_v23  ;;  %1575 = vmatprep.subr.bf16.mxu0 %v1751_v31 }
 0x31a   :  { %773 = vmatprep.mubr.bf16.mxu0 %v2098_v39 }
 0x31c   :  { %1576 = vmatpush3.bf16.msra.mxu0 %v1752_v32 }
 0x31d   :  { %1577 = vmatprep.subr.bf16.mxu0 %v1753_v33 }
 0x320   :  { %1578 = vmatpush3.bf16.msra.mxu0 %v1754_v34 }
 0x321   :  { %774 = vmatmul.mubr.bf16.gmra.mrb[28].mxu0 %v570_v22 }
 0x3dc   :  { %v1535_v36 = vpop.f32.mrb[16].mxu0 }
 0x3dd   :  { %v1536_v38 = vpop.f32.mrb[17].mxu0 }
 0x3de   :  { %v1537_v39 = vadd.f32 %v1536_v38, %v1535_v36  ;;  %v1538_v40 = vpop.f32.mrb[18].mxu0  ;;  %v1755_v38 = vld [vmem:[#allocation7 + $0x170] sm:$0xff]  }
 0x3df   :  { %v1539_v42 = vpop.f32.mrb[19].mxu0  ;;  %1579 = vmatprep.subr.bf16.mxu0 %v1755_v38 }
 0x3e0   :  { %v752_v43 = vadd.f32 %v1537_v39, %v1424_v37  ;;  %v1540_v44 = vadd.f32 %v1539_v42, %v1538_v40  ;;  %v1756_v39 = vld [vmem:[#allocation7 + $0x130] sm:$0xff]   ;;  %v1757_v40 = vld [vmem:[#allocation7 + $0x178] sm:$0xff]   ;;  %v1759_v42 = vld [vmem:[%s2193_s5] sm:$0xff]  }
 0x3e1   :  { %1580 = vmatpush3.bf16.msra.mxu0 %v1756_v39 }
 0x3e2   :  { %v755_v46 = vadd.f32 %v1540_v44, %v1425_v41  ;;  %v782_v47 = vmax.f32 %v752_v43, 0.0  ;;  %v1758_v41 = vld [vmem:[#allocation7 + $0x138] sm:$0xff]   ;;  %1581 = vmatprep.subr.bf16.mxu0 %v1757_v40 }
 0x3e4   :  { %v783_v48 = vmax.f32 %v755_v46, 0.0  ;;  %v1541_v49 = vpop.f32.mrb[20].mxu0 }
 0x3e5   :  { %v1542_v51 = vpop.f32.mrb[21].mxu0  ;;  %1582 = vmatpush3.bf16.msra.mxu0 %v1758_v41 }
 0x3e6   :  { %v1543_v52 = vadd.f32 %v1542_v51, %v1541_v49  ;;  %v1544_v53 = vpop.f32.mrb[22].mxu0  ;;  %v790_v55 = vpack.c.bf16 %v783_v48, %v782_v47 }
 0x3e7   :  { %v1545_v60 = vpop.f32.mrb[23].mxu0 }
 0x3e8   :  { %v760_v61 = vadd.f32 %v1543_v52, %v1428_v50  ;;  %v1546_v62 = vadd.f32 %v1545_v60, %v1544_v53  ;;  %1651 = vmatprep.subr.bf16.mxu1 %v790_v55  ;;  %1049 = vmatprep.mubr.bf16.mxu0 %v790_v55 }
 0x3e9   :  { %1652 = vmatpush3.bf16.msra.mxu1 %v790_v55 }
 0x3ea   :  { %v763_v1 = vadd.f32 %v1546_v62, %v1429_v54  ;;  %v784_v2 = vmax.f32 %v760_v61, 0.0 }
 0x3ec   :  { %v785_v3 = vmax.f32 %v763_v1, 0.0  ;;  %v1547_v5 = vpop.f32.mrb[24].mxu0 }
 0x3ed   :  { %v1548_v7 = vpop.f32.mrb[25].mxu0 }
 0x3ee   :  { %v1549_v8 = vadd.f32 %v1548_v7, %v1547_v5  ;;  %v1550_v12 = vpop.f32.mrb[26].mxu0  ;;  %v791_v16 = vpack.c.bf16 %v785_v3, %v784_v2  ;;  %v1440_v2 = vunpack.c.l.bf16 %v1439_v0  ;;  %v1441_v7 = vunpack.c.h.bf16 %v1439_v0 }
 0x3ef   :  { %v1551_v17 = vpop.f32.mrb[27].mxu0 }
 0x3f0   :  { %v768_v19 = vadd.f32 %v1549_v8, %v1432_v6  ;;  %v1552_v20 = vadd.f32 %v1551_v17, %v1550_v12  ;;  %1653 = vmatprep.subr.bf16.mxu1 %v791_v16 }
 0x3f1   :  { %1654 = vmatpush3.bf16.msra.mxu1 %v791_v16 }
 0x3f2   :  { %v771_v22 = vadd.f32 %v1552_v20, %v1433_v14  ;;  %v786_v23 = vmax.f32 %v768_v19, 0.0 }
 0x3f4   :  { %v787_v18 = vmax.f32 %v771_v22, 0.0  ;;  %v1553_v24 = vpop.f32.mrb[28].mxu0 }
 0x3f5   :  { %v1554_v26 = vpop.f32.mrb[29].mxu0 }
 0x3f6   :  { %v1555_v27 = vadd.f32 %v1554_v26, %v1553_v24  ;;  %v1556_v28 = vpop.f32.mrb[30].mxu0  ;;  %v792_v30 = vpack.c.bf16 %v787_v18, %v786_v23 }
 0x3f7   :  { %v1557_v31 = vpop.f32.mrb[31].mxu0 }
 0x3f8   :  { %v776_v32 = vadd.f32 %v1555_v27, %v1436_v25  ;;  %v1558_v33 = vadd.f32 %v1557_v31, %v1556_v28  ;;  %1655 = vmatprep.subr.bf16.mxu1 %v792_v30 }
 0x3f9   :  { %1656 = vmatpush3.bf16.msra.mxu1 %v792_v30 }
 0x3fa   :  { %v779_v34 = vadd.f32 %v1558_v33, %v1437_v29  ;;  %v788_v35 = vmax.f32 %v776_v32, 0.0 }
 0x3fc   :  { %v789_v36 = vmax.f32 %v779_v34, 0.0 }
 0x3fe   :  { %v793_v37 = vpack.c.bf16 %v789_v36, %v788_v35 }
 0x400   :  { %1657 = vmatprep.subr.bf16.mxu1 %v793_v37 }
 0x401   :  { %1658 = vmatpush3.bf16.msra.mxu1 %v793_v37 }
 0x402   :  { %1667 = vmatprep.subr.bf16.mxu1 %v1759_v42 }
 0x404   :  { %1660 = vmatmul.mubr.msk.bf16.vlgmr.msra.gmra.mrb[16].mxu1 %vm151_vm0, %v2049_v10  ;;  %v1760_v10 = vld [vmem:[%s2193_s5 + $0x8] sm:$0xff]  }
 0x405   :  { %1663 = vmatprep.mubr.msk.bf16.mxu1 %vm151_vm0, %v2051_v11  ;;  %1668 = vmatpush3.bf16.msra.mxu1 %v1759_v42  ;;  %v1761_v11 = vld [vmem:[%s2193_s5 + $0x10] sm:$0xff]  }
 0x406   :  { %1669 = vmatprep.subr.bf16.mxu1 %v1760_v10 }
 0x409   :  { %1670 = vmatpush3.bf16.msra.mxu1 %v1760_v10 }
 0x40a   :  { %1671 = vmatprep.subr.bf16.mxu1 %v1761_v11 }
 0x40c   :  { %1664 = vmatmul.mubr.msk.bf16.gmra.mrb[20].mxu1 %vm151_vm0, %v2057_v15 }
 0x40d   :  { %1672 = vmatpush3.bf16.msra.mxu1 %v1761_v11  ;;  %v1462_v11 = vld [vmem:[#allocation8 + $0x58] sm:$0xff]  }
 0x4d7   :  { %v1661_v15 = vpop.f32.mrb[16].mxu1 }
 0x4d8   :  { %v828_v43 = vpop.f32.mrb[17].mxu1  ;;  %v861_v45 = vmul.f32 %v1661_v15, %v2110_v57 }
 0x4d9   :  { %v1662_v44 = vpop.f32.mrb[18].mxu1  ;;  %v859_v48 = vmul.f32 %v828_v43, %v2108_v56 }
 0x4da   :  { %v862_v46 = vmul.f32 %v1662_v44, %v2114_v59  ;;  %v831_v47 = vpop.f32.mrb[19].mxu1 }
 0x4db   :  { %v860_v49 = vmul.f32 %v831_v47, %v2112_v58  ;;  %v1762_v58 = vld [vmem:[%s2193_s5 + $0x18] sm:$0xff]  }
 0x4dc   :  { %v868_v50 = vpack.c.bf16 %v862_v46, %v861_v45  ;;  %1673 = vmatprep.subr.bf16.mxu1 %v1762_v58  ;;  %v1452_v46 = vunpack.c.l.bf16 %v1462_v11 }
 0x4dd   :  { %v867_v51 = vpack.c.bf16 %v860_v49, %v859_v48  ;;  %1674 = vmatpush3.bf16.msra.mxu1 %v1762_v58 }
 0x4df   :  { %v1665_v52 = vpop.f32.mrb[20].mxu1  ;;  %1050 = vmatmul.mubr.bf16.vlgmr.msra.gmra.mrb[32].mxu0 %v867_v51 }
 0x4e0   :  { %v844_v53 = vpop.f32.mrb[21].mxu1  ;;  %1057 = vmatprep.mubr.bf16.mxu0 %v791_v16  ;;  %v865_v55 = vmul.f32 %v1665_v52, %v2124_v9  ;;  %v1763_v9 = vld [vmem:[%s2193_s5 + $0x20] sm:$0xff]   ;;  %v1460_v16 = vld [vmem:[#allocation8 + $0x48] sm:$0xff]  }
 0x4e1   :  { %v1666_v54 = vpop.f32.mrb[22].mxu1  ;;  %v863_v57 = vmul.f32 %v844_v53, %v2116_v63  ;;  %1675 = vmatprep.subr.bf16.mxu1 %v1763_v9  ;;  %v1764_v63 = vld [vmem:[%s2193_s5 + $0x28] sm:$0xff]   ;;  %v1444_v22 = vunpack.c.l.bf16 %v1460_v16  ;;  %v1445_v25 = vunpack.c.h.bf16 %v1460_v16 }
 0x4e2   :  { %v866_v60 = vmul.f32 %v1666_v54, %v2127_v13  ;;  %v847_v61 = vpop.f32.mrb[23].mxu1  ;;  %1676 = vmatpush3.bf16.msra.mxu1 %v1763_v9  ;;  %v1766_v13 = vld [vmem:[%s2193_s5 + $0x38] sm:$0xff]  }
 0x4e3   :  { %v864_v59 = vmul.f32 %v847_v61, %v2121_v4  ;;  %1677 = vmatprep.subr.bf16.mxu1 %v1764_v63  ;;  %v1765_v4 = vld [vmem:[%s2193_s5 + $0x30] sm:$0xff]  }
 0x4e4   :  { %v870_v62 = vpack.c.bf16 %v866_v60, %v865_v55 }
 0x4e5   :  { %v869_v56 = vpack.c.bf16 %v864_v59, %v863_v57  ;;  %v1397_v59 = vld [vmem:[%s2194_s6] ss:$0 sm:$0xff]  ;;  %s1924_s6 = smov [#allocation10]  }
 0x4e6   :  { %1678 = vmatpush3.bf16.msra.mxu1 %v1764_v63  ;;  %s1315_s29 = sshll.u32 %s1924_s6, 4  ;;  %s1316_s29 = int_to_ptr.vmem [resolvable:$true] %s1315_s29 }
 0x4e7   :  { %1058 = vmatmul.mubr.bf16.gmra.mrb[36].mxu0 %v868_v50  ;;  %1679 = vmatprep.subr.bf16.mxu1 %v1765_v4  ;;  %v1453_v50 = vunpack.c.h.bf16 %v1462_v11  ;;  %s1887_s30 = scalar_lea.vmem %s1316_s29, 1024  ;;  %p1892_p5 = scmp.lt.s32.totalorder %s1316_s29, %s1316_s29 }
 0x4e8   :  { %1065 = vmatprep.mubr.bf16.mxu0 %v792_v30  ;;  %v1461_v30 = vld [vmem:[#allocation8 + $0x50] sm:$0xff]   ;;  %p1888_p4 = scmp.ne.s32.totalorder %s1316_s29, %s1887_s30  ;;  %p1893_p6 = scmp.lt.s32.totalorder %s1887_s30, %s1887_s30 }
 0x4e9   :  { %v1448_v35 = vunpack.c.l.bf16 %v1461_v30  ;;  %v1449_v40 = vunpack.c.h.bf16 %v1461_v30 }
 0x4ea   :  { %1680 = vmatpush3.bf16.msra.mxu1 %v1765_v4  ;;  %p1894_p7 = por %p1893_p6, %p1892_p5 }
 0x4eb   :  { %1681 = vmatprep.subr.bf16.mxu1 %v1766_v13 }
 0x4ec   :  { %p1895_p8 = pnand %p1894_p7, %p1888_p4 }
 0x4ee   :  { %1682 = vmatpush3.bf16.msra.mxu1 %v1766_v13 }
 0x4ef   :  { %1066 = vmatmul.mubr.bf16.gmra.mrb[40].mxu0 %v869_v56 }
 0x4f0   :  { %1073 = vmatprep.mubr.bf16.mxu0 %v793_v37 }
 0x4f7   :  { %1074 = vmatmul.mubr.bf16.gmra.mrb[44].mxu0 %v870_v62 }
 0x5b2   :  { %v1583_v1 = vpop.f32.mrb[32].mxu0 }
 0x5b3   :  { %v1584_v3 = vpop.f32.mrb[33].mxu0 }
 0x5b4   :  { %v1585_v5 = vadd.f32 %v1584_v3, %v1583_v1  ;;  %v1586_v6 = vpop.f32.mrb[34].mxu0 }
 0x5b5   :  { %v1587_v8 = vpop.f32.mrb[35].mxu0 }
 0x5b6   :  { %v1052_v12 = vadd.f32 %v1585_v5, %v1440_v2  ;;  %v1588_v14 = vadd.f32 %v1587_v8, %v1586_v6 }
 0x5b8   :  { %v1055_v17 = vadd.f32 %v1588_v14, %v1441_v7  ;;  %v1082_v19 = vmax.f32 %v1052_v12, 0.0 }
 0x5ba   :  { %v1083_v20 = vmax.f32 %v1055_v17, 0.0  ;;  %v1589_v21 = vpop.f32.mrb[36].mxu0 }
 0x5bb   :  { %v1590_v23 = vpop.f32.mrb[37].mxu0 }
 0x5bc   :  { %v1591_v18 = vadd.f32 %v1590_v23, %v1589_v21  ;;  %v1592_v24 = vpop.f32.mrb[38].mxu0  ;;  %v1090_v26 = vpack.c.bf16 %v1083_v20, %v1082_v19 }
 0x5bd   :  { %v1593_v27 = vpop.f32.mrb[39].mxu0 }
 0x5be   :  { %v1060_v28 = vadd.f32 %v1591_v18, %v1444_v22  ;;  %v1594_v29 = vadd.f32 %v1593_v27, %v1592_v24  ;;  %1683 = vmatprep.mubr.bf16.mxu1 %v1090_v26 }
 0x5c0   :  { %v1063_v31 = vadd.f32 %v1594_v29, %v1445_v25  ;;  %v1084_v32 = vmax.f32 %v1060_v28, 0.0 }
 0x5c2   :  { %v1085_v33 = vmax.f32 %v1063_v31, 0.0  ;;  %v1595_v34 = vpop.f32.mrb[40].mxu0 }
 0x5c3   :  { %v1596_v36 = vpop.f32.mrb[41].mxu0 }
 0x5c4   :  { %v1091_v37 = vpack.c.bf16 %v1085_v33, %v1084_v32  ;;  %v1597_v38 = vadd.f32 %v1596_v36, %v1595_v34  ;;  %v1598_v39 = vpop.f32.mrb[42].mxu0 }
 0x5c5   :  { %v1599_v41 = vpop.f32.mrb[43].mxu0 }
 0x5c6   :  { %v1068_v42 = vadd.f32 %v1597_v38, %v1448_v35  ;;  %v1600_v10 = vadd.f32 %v1599_v41, %v1598_v39  ;;  %1684 = vmatmul.mubr.bf16.vlgmr.msra.gmra.mrb[24].mxu1 %v1091_v37 }
 0x5c8   :  { %v1071_v15 = vadd.f32 %v1600_v10, %v1449_v40  ;;  %v1086_v43 = vmax.f32 %v1068_v42, 0.0 }
 0x5ca   :  { %v1087_v44 = vmax.f32 %v1071_v15, 0.0  ;;  %v1601_v45 = vpop.f32.mrb[44].mxu0 }
 0x5cb   :  { %v1602_v47 = vpop.f32.mrb[45].mxu0 }
 0x5cc   :  { %v1603_v48 = vadd.f32 %v1602_v47, %v1601_v45  ;;  %v1604_v49 = vpop.f32.mrb[46].mxu0  ;;  %v1092_v51 = vpack.c.bf16 %v1087_v44, %v1086_v43 }
 0x5cd   :  { %v1605_v52 = vpop.f32.mrb[47].mxu0 }
 0x5ce   :  { %v1076_v53 = vadd.f32 %v1603_v48, %v1452_v46  ;;  %v1606_v54 = vadd.f32 %v1605_v52, %v1604_v49  ;;  %1687 = vmatprep.mubr.bf16.mxu1 %v1092_v51 }
 0x5d0   :  { %v1079_v55 = vadd.f32 %v1606_v54, %v1453_v50  ;;  %v1088_v60 = vmax.f32 %v1076_v53, 0.0 }
 0x5d2   :  { %v1089_v61 = vmax.f32 %v1079_v55, 0.0 }
 0x5d4   :  { %v1093_v57 = vpack.c.bf16 %v1089_v61, %v1088_v60 }
 0x5d6   :  { %1688 = vmatmul.mubr.bf16.gmra.mrb[28].mxu1 %v1093_v57 }
 0x699   :  { %v1685_v62 = vpop.f32.mrb[24].mxu1 }
 0x69a   :  { %v1208_v56 = vadd.f32 %v1685_v62, %v1397_v59  ;;  %v1199_v58 = vpop.f32.mrb[25].mxu1 }
 0x69b   :  { %v1686_v9 = vpop.f32.mrb[26].mxu1  ;;  %v1200_v13 = vadd.f32 %v1397_v59, %v1199_v58 }
 0x69c   :  { %1234 = vmax.xlane.f32.xlu0 %v1208_v56  ;;  %v1202_v63 = vpop.f32.mrb[27].mxu1  ;;  %v1211_v0 = vadd.f32 %v1686_v9, %v1397_v59 }
 0x69d   :  { %v1203_v4 = vadd.f32 %v1397_v59, %v1202_v63 }
 0x69f   :  { %1232 = vmax.xlane.f32.xlu1 %v1203_v4 }
 0x6a0   :  { %1230 = vmax.xlane.f32.xlu0 %v1200_v13 }
 0x6a4   :  { %1236 = vmax.xlane.f32.xlu0 %v1211_v0 }
 0x6a9   :  { %v1689_v1 = vpop.f32.mrb[28].mxu1 }
 0x6aa   :  { %v1215_v2 = vpop.f32.mrb[29].mxu1  ;;  %v1224_v8 = vadd.f32 %v1689_v1, %v1397_v59 }
 0x6ab   :  { %v1216_v3 = vadd.f32 %v1397_v59, %v1215_v2  ;;  %v1690_v5 = vpop.f32.mrb[30].mxu1 }
 0x6ac   :  { %v1218_v6 = vpop.f32.mrb[31].mxu1  ;;  %v1227_v12 = vadd.f32 %v1690_v5, %v1397_v59 }
 0x6ad   :  { %v1219_v7 = vadd.f32 %v1397_v59, %v1218_v6  ;;  %1238 = vmax.xlane.f32.xlu1 %v1216_v3 }
 0x6af   :  { %1240 = vmax.xlane.f32.xlu0 %v1219_v7 }
 0x6b1   :  { %1242 = vmax.xlane.f32.xlu1 %v1224_v8 }
 0x6b3   :  { %1244 = vmax.xlane.f32.xlu0 %v1227_v12 }
 0x729   :  { %v1235_v14 = vpop.xlane.xlu0 %1234 }
 0x72a   :  { %v1248_v16 = vsub.f32 %v1208_v56, %v1235_v14 }
 0x72c   :  { %v1258_v17 = vmul.f32 1.442695, %v1248_v16  ;;  %v1233_v21 = vpop.xlane.xlu1 %1232 }
 0x72d   :  { %v1231_v19 = vpop.xlane.xlu0 %1230  ;;  %v1247_v18 = vsub.f32 %v1203_v4, %v1233_v21 }
 0x72e   :  { %1767 = vpow2.f32 %v1258_v17  ;;  %v1246_v20 = vsub.f32 %v1200_v13, %v1231_v19 }
 0x72f   :  { %v1256_v26 = vmul.f32 1.442695, %v1247_v18 }
 0x730   :  { %v1254_v22 = vmul.f32 1.442695, %v1246_v20 }
 0x731   :  { %v1237_v23 = vpop.xlane.xlu0 %1236 }
 0x732   :  { %1769 = vpow2.f32 %v1254_v22  ;;  %v1249_v24 = vsub.f32 %v1211_v0, %v1237_v23 }
 0x734   :  { %v1260_v25 = vmul.f32 1.442695, %v1249_v24 }
 0x736   :  { %1771 = vpow2.f32 %v1260_v25 }
 0x737   :  { %1773 = vpow2.f32 %v1256_v26 }
 0x738   :  { %v1768_v27 = vpop.eup %1767 }
 0x739   :  { %1274 = vadd.xlane.f32.xlu1 %v1768_v27 }
 0x73a   :  { %v1239_v28 = vpop.xlane.xlu1 %1238 }
 0x73b   :  { %v1250_v29 = vsub.f32 %v1216_v3, %v1239_v28 }
 0x73c   :  { %v1770_v30 = vpop.eup %1769  ;;  %v1241_v31 = vpop.xlane.xlu0 %1240 }
 0x73d   :  { %v1262_v32 = vmul.f32 1.442695, %v1250_v29  ;;  %v1251_v33 = vsub.f32 %v1219_v7, %v1241_v31  ;;  %1270 = vadd.xlane.f32.xlu1 %v1770_v30 }
 0x73e   :  { %v1243_v34 = vpop.xlane.xlu1 %1242 }
 0x73f   :  { %1775 = vpow2.f32 %v1262_v32  ;;  %v1264_v35 = vmul.f32 1.442695, %v1251_v33  ;;  %v1252_v36 = vsub.f32 %v1224_v8, %v1243_v34 }
 0x740   :  { %v1772_v37 = vpop.eup %1771  ;;  %v1245_v38 = vpop.xlane.xlu0 %1244 }
 0x741   :  { %1777 = vpow2.f32 %v1264_v35  ;;  %v1266_v39 = vmul.f32 1.442695, %v1252_v36  ;;  %v1253_v40 = vsub.f32 %v1227_v12, %v1245_v38  ;;  %1276 = vadd.xlane.f32.xlu0 %v1772_v37  ;;  %v1774_v42 = vpop.eup %1773 }
 0x743   :  { %1779 = vpow2.f32 %v1266_v39  ;;  %v1268_v41 = vmul.f32 1.442695, %v1253_v40 }
 0x745   :  { %1781 = vpow2.f32 %v1268_v41  ;;  %1272 = vadd.xlane.f32.xlu0 %v1774_v42 }
 0x749   :  { %v1776_v10 = vpop.eup %1775 }
 0x74a   :  { %1278 = vadd.xlane.f32.xlu1 %v1776_v10 }
 0x74b   :  { %v1778_v11 = vpop.eup %1777 }
 0x74c   :  { %1280 = vadd.xlane.f32.xlu0 %v1778_v11 }
 0x74d   :  { %v1780_v15 = vpop.eup %1779 }
 0x74e   :  { %1282 = vadd.xlane.f32.xlu1 %v1780_v15 }
 0x74f   :  { %v1782_v43 = vpop.eup %1781 }
 0x750   :  { %1284 = vadd.xlane.f32.xlu0 %v1782_v43 }
 0x7c6   :  { %v1275_v44 = vpop.xlane.xlu1 %1274 }
 0x7c7   :  { %1783 = vrcp.f32 %v1275_v44 }
 0x7ca   :  { %v1271_v45 = vpop.xlane.xlu1 %1270 }
 0x7cb   :  { %1785 = vrcp.f32 %v1271_v45 }
 0x7ce   :  { %v1277_v46 = vpop.xlane.xlu0 %1276 }
 0x7cf   :  { %1787 = vrcp.f32 %v1277_v46 }
 0x7d1   :  { %v1784_v47 = vpop.eup %1783 }
 0x7d2   :  { %v1296_v48 = vmul.f32 %v1784_v47, %v1768_v27  ;;  %v1273_v49 = vpop.xlane.xlu0 %1272 }
 0x7d3   :  { %1789 = vrcp.f32 %v1273_v49 }
 0x7d4   :  { %1304 = vst [vmem:[#allocation10 + $0x10] sm:$0xff] %v1296_v48 }
 0x7d5   :  { %v1786_v50 = vpop.eup %1785 }
 0x7d6   :  { %v1294_v51 = vmul.f32 %v1786_v50, %v1770_v30 }
 0x7d7   :  { %v1279_v52 = vpop.xlane.xlu1 %1278 }
 0x7d8   :  { %1302 = vst [vmem:[#allocation10] sm:$0xff] %v1294_v51  ;;  %1791 = vrcp.f32 %v1279_v52 }
 0x7d9   :  { %v1788_v53 = vpop.eup %1787  ;;  %v1281_v54 = vpop.xlane.xlu0 %1280 }
 0x7da   :  { %v1297_v55 = vmul.f32 %v1788_v53, %v1772_v37  ;;  %1793 = vrcp.f32 %v1281_v54 }
 0x7db   :  { %v1283_v60 = vpop.xlane.xlu1 %1282 }
 0x7dc   :  { %1305 = vst [vmem:[#allocation10 + $0x18] sm:$0xff] %v1297_v55  ;;  %1795 = vrcp.f32 %v1283_v60 }
 0x7dd   :  { %v1790_v61 = vpop.eup %1789  ;;  %v1285_v57 = vpop.xlane.xlu0 %1284 }
 0x7de   :  { %v1295_v59 = vmul.f32 %v1790_v61, %v1774_v42  ;;  %1797 = vrcp.f32 %v1285_v57 }
 0x7e0   :  { %1303 = vst [vmem:[#allocation10 + $0x8] sm:$0xff] %v1295_v59 }
 0x7e2   :  { %v1792_v62 = vpop.eup %1791 }
 0x7e3   :  { %v1298_v56 = vmul.f32 %v1792_v62, %v1776_v10 }
 0x7e4   :  { %v1794_v58 = vpop.eup %1793 }
 0x7e5   :  { %1306 = vst [vmem:[#allocation10 + $0x20] sm:$0xff] %v1298_v56  ;;  %v1299_v9 = vmul.f32 %v1794_v58, %v1778_v11 }
 0x7e6   :  { %v1796_v63 = vpop.eup %1795 }
 0x7e7   :  { %1307 = vst [vmem:[#allocation10 + $0x28] sm:$0xff] %v1299_v9  ;;  %v1300_v4 = vmul.f32 %v1796_v63, %v1780_v15 }
 0x7e8   :  { %v1798_v13 = vpop.eup %1797 }
 0x7e9   :  { %1308 = vst [vmem:[#allocation10 + $0x30] sm:$0xff] %v1300_v4  ;;  %v1301_v0 = vmul.f32 %v1798_v13, %v1782_v43 }
 0x7eb   :  { %1309 = vst [vmem:[#allocation10 + $0x38] sm:$0xff] %v1301_v0 }
 0x7ec   :  { %1898 = shalt.err (!%p1895_p8)
}
 0x7ed   :  { %s1899_s10 = scalar_lea.hbm %s2195_s7, 1024 }
 0x7ee   :  { %p1900_p9 = scmp.ne.s32.totalorder %s2195_s7, %s1899_s10  ;;  %p1903_p10 = scmp.lt.u32.totalorder %s1899_s10, %s2195_s7 }
 0x7f0   :  { %p1905_p11 = pnand %p1903_p10, %p1900_p9 }
 0x7f2   :  { %1908 = shalt.err (!%p1905_p11)
}
 0x7f3   :  { %s1925_s0 = smov 128   ;;  %s1926_s27 = smov 8  }
 0x7f4   :  { %1321 = dma.vmem_to_hbm [thread:$0]  %s1316_s29, 1024, %s2195_s7, [#allocation4], %s1925_s0, %s1925_s0, %s1926_s27  }
 0x7f5   :  { %1915 = dma.done.wait [#allocation4], 1024  }
 0x7f6   :  { %1916 = vsyncadd [#allocation4], 4294966272 }
 0x7f7   :  { %1325 = vsyncpa [#allocation3], 1 }
 0x7f8   :  { %1326 = vsyncpa [#allocation6], 1 }
 0x7f9   :  { %1327 = vsyncpa [#allocation9], 1 }
 0x7fa   :  { %1328 = vsyncpa [#allocation4], 1 }

</bundles_post_ra>
